<compile_context>
chip_gen: v5e
topology: v5e:2x2
jax: 0.10.0
libtpu: 0.0.40
codegen_flags: <defaults>
</compile_context>

<pallas_src>
import functools

import numpy as np
import jax
import jax.numpy as jnp
from jax.experimental import pallas as pl
from jax.experimental.pallas import tpu as pltpu

LANE = 128      # lane width: feature dims padded to a multiple of this
SUBLANE = 8     # sublane width: batch padded to a multiple of this
BN_EPS = 1e-5

# bf16 MXU inputs + f32 accumulation (post-matmul math stays f32 — v5e has no
# bf16 VALU/EUP). Halves weight DMA bytes and gives native-MXU throughput on
# all three generations.
USE_BF16_MATMUL = True

# Below this padded batch size the BN stats are reduced with jnp.sum (XLU);
# at/above it the ones-row MXU one-pass trick is used instead.
MXU_STATS_MIN_BATCH = 256


def _round_up(n, m):
    return ((n + m - 1) // m) * m


# ---------------------------------------------------------------------------
# Single fused kernel over the whole encoder stack (gridless, all-resident).
# refs = (x, [W0, vec0, W1, vec1, ...], out)
#   Wi  : [din_pad, dout_pad]  (pre-transposed, zero-padded, bf16 or f32)
#   veci: [8, dout_pad] f32; row0 = bias, row1 = gamma, row2 = beta
# ---------------------------------------------------------------------------
def _make_fused_encoder_kernel(n_layers, real_batch, batch_pad,
                               use_bf16, use_mxu_stats):
    mm_dtype = jnp.bfloat16 if use_bf16 else jnp.float32

    def kernel(*refs):
        x_ref = refs[0]
        o_ref = refs[-1]
        p_refs = refs[1:-1]

        h = x_ref[...]  # already in mm_dtype from the wrapper

        need_row_mask = batch_pad != real_batch
        inv_b = jnp.float32(1.0 / float(real_batch))
        ones_row = None
        row_mask = None
        if use_mxu_stats:
            if need_row_mask:
                ids = jax.lax.broadcasted_iota(jnp.int32, (1, batch_pad), 1)
                ones_row = (ids < real_batch).astype(jnp.float32)
            else:
                ones_row = jnp.ones((1, batch_pad), jnp.float32)
        elif need_row_mask:
            ids = jax.lax.broadcasted_iota(jnp.int32, (batch_pad, 1), 0)
            row_mask = (ids < real_batch).astype(jnp.float32)

        for layer in range(n_layers):
            w_ref, v_ref = p_refs[2 * layer: 2 * layer + 2]

            # Linear on the MXU, f32 accumulation.
            h = jnp.dot(h.astype(mm_dtype), w_ref[...],
                        preferred_element_type=jnp.float32)
            h = h + v_ref[0:1, :]            # bias
            h = jnp.maximum(h, 0.0)          # ReLU; Dropout(p=0.0) == identity

            # BatchNorm1d batch statistics over the *real* rows only.
            if use_mxu_stats:
                s1 = jnp.dot(ones_row, h, preferred_element_type=jnp.float32)
                s2 = jnp.dot(ones_row, h * h,
                             preferred_element_type=jnp.float32)
            else:
                hm = h * row_mask if need_row_mask else h
                s1 = jnp.sum(hm, axis=0, keepdims=True)
                s2 = jnp.sum(hm * h, axis=0, keepdims=True)
            mean = s1 * inv_b
            var = jnp.maximum(s2 * inv_b - mean * mean, 0.0)  # biased variance
            inv_std = jax.lax.rsqrt(var + BN_EPS)              # EUP

            # Folded BN affine: one multiply + one add per element.
            scale = inv_std * v_ref[1:2, :]
            shift = v_ref[2:3, :] - mean * scale
            h = h * scale + shift

        o_ref[...] = h.astype(o_ref.dtype)

    return kernel


# ---------------------------------------------------------------------------
# One-time parameter packing (call once, reuse across forwards).
# params: list of (W [out,in], b [out], gamma [out], beta [out]) in PyTorch layout.
# ---------------------------------------------------------------------------
def prepare_encoder_params(params, use_bf16=USE_BF16_MATMUL):
    f32 = jnp.float32
    mm_dtype = jnp.bfloat16 if use_bf16 else f32
    dims = tuple([params[0][0].shape[1]] + [w.shape[0] for (w, _, _, _) in params])
    dims_pad = tuple(_round_up(d, LANE) for d in dims)

    packed = []
    for li, (w, b, g, beta) in enumerate(params):
        d_out, d_in = w.shape
        din_p, dout_p = dims_pad[li], dims_pad[li + 1]
        w_p = jnp.zeros((din_p, dout_p), f32)
        w_p = w_p.at[:d_in, :d_out].set(jnp.asarray(w, f32).T).astype(mm_dtype)
        v_p = jnp.zeros((SUBLANE, dout_p), f32)
        v_p = v_p.at[1, :].set(1.0)                       # gamma pad value
        v_p = v_p.at[0, :d_out].set(jnp.asarray(b, f32))   # bias
        v_p = v_p.at[1, :d_out].set(jnp.asarray(g, f32))   # gamma
        v_p = v_p.at[2, :d_out].set(jnp.asarray(beta, f32))  # beta
        packed += [w_p, v_p]
    return tuple(packed), dims, dims_pad, use_bf16


def _cost_and_vmem(batch_pad, dims_pad, n_layers, use_bf16, use_mxu_stats,
                   out_itemsize):
    in_item = 2 if use_bf16 else 4
    x_bytes = batch_pad * dims_pad[0] * in_item
    w_bytes = sum(dims_pad[i] * dims_pad[i + 1] * in_item for i in range(n_layers))
    v_bytes = sum(SUBLANE * dims_pad[i + 1] * 4 for i in range(n_layers))
    out_bytes = batch_pad * dims_pad[-1] * out_itemsize
    d_max = max(dims_pad)
    live_act_bytes = 4 * batch_pad * d_max * 4        # h, h*h, bf16 copy, headroom
    total = x_bytes + w_bytes + v_bytes + out_bytes + live_act_bytes
    vmem_limit = int(min(100 << 20, max(8 << 20, 2 * total)))

    flops = 0
    for i in range(n_layers):
        flops += 2 * batch_pad * dims_pad[i] * dims_pad[i + 1]
        if use_mxu_stats:
            flops += 4 * batch_pad * dims_pad[i + 1]
        flops += 8 * batch_pad * dims_pad[i + 1]        # bias/relu/h*h/scale/shift
    transcendentals = sum(dims_pad[1:])                  # one rsqrt per feature
    cost = pl.CostEstimate(flops=int(flops),
                           transcendentals=int(transcendentals),
                           bytes_accessed=int(x_bytes + w_bytes + v_bytes + out_bytes))
    return cost, vmem_limit


@functools.lru_cache(maxsize=None)
def _get_forward_fn(n_layers, real_batch, d_in, d_out, dims_pad, use_bf16,
                    out_dtype_name):
    out_dtype = np.dtype(out_dtype_name)
    mm_dtype = jnp.bfloat16 if use_bf16 else jnp.float32
    batch_pad = _round_up(max(real_batch, SUBLANE), SUBLANE)
    use_mxu_stats = batch_pad >= MXU_STATS_MIN_BATCH

    kernel = _make_fused_encoder_kernel(n_layers, real_batch, batch_pad,
                                        use_bf16, use_mxu_stats)
    cost, vmem_limit = _cost_and_vmem(batch_pad, dims_pad, n_layers, use_bf16,
                                      use_mxu_stats, out_dtype.itemsize)
    vmem_spec = pl.BlockSpec(memory_space=pltpu.MemorySpace.VMEM)
    n_in = 1 + 2 * n_layers

    call = pl.pallas_call(
        kernel,
        out_shape=jax.ShapeDtypeStruct((batch_pad, dims_pad[-1]), out_dtype),
        in_specs=[vmem_spec] * n_in,
        out_specs=vmem_spec,
        compiler_params=pltpu.CompilerParams(vmem_limit_bytes=vmem_limit),
        cost_estimate=cost,
    )

    @jax.jit
    def fwd(x, packed_args):
        xm = x.astype(mm_dtype)
        pad_b = batch_pad - real_batch
        pad_d = dims_pad[0] - d_in
        if pad_b or pad_d:
            xm = jnp.pad(xm, ((0, pad_b), (0, pad_d)))
        out_p = call(xm, *packed_args)
        return out_p[:real_batch, :d_out]

    return fwd


def nn_encoder_forward(cell_src, prepared):
    packed_args, dims, dims_pad, use_bf16 = prepared
    B, d_in = cell_src.shape
    assert d_in == dims[0], (d_in, dims[0])
    fwd = _get_forward_fn(len(dims) - 1, B, d_in, dims[-1], dims_pad, use_bf16,
                          np.dtype(cell_src.dtype).name)
    return fwd(cell_src, packed_args)


# ---------------------------------------------------------------------------
# Parameter init mimicking nn.Linear / nn.BatchNorm1d defaults (PyTorch layout).
# ---------------------------------------------------------------------------
def init_nn_encoder_params(key, input_dim, out_dim, hid_dims):
    dims = [input_dim] + list(hid_dims) + [out_dim]
    params = []
    for i in range(len(dims) - 1):
        d_in, d_out = dims[i], dims[i + 1]
        key, kw, kb = jax.random.split(key, 3)
        bound = 1.0 / float(np.sqrt(d_in))
        w = jax.random.uniform(kw, (d_out, d_in), jnp.float32, -bound, bound)
        b = jax.random.uniform(kb, (d_out,), jnp.float32, -bound, bound)
        gamma = jnp.ones((d_out,), jnp.float32)    # BatchNorm1d weight
        beta = jnp.zeros((d_out,), jnp.float32)    # BatchNorm1d bias
        params.append((w, b, gamma, beta))
    return params


# Pure-JAX reference (PyTorch train-mode semantics). With mirror_bf16=True the
# Linear inputs are cast to bf16 exactly as the kernel does, so the tolerance
# validates the kernel logic (padding, masking, folded affine, stats) rather
# than bf16 quantization of the MXU inputs.
def _reference_forward(cell_src, params, mirror_bf16=False):
    h = jnp.asarray(cell_src, jnp.float32)
    for (w, b, g, beta) in params:
        wt = jnp.asarray(w, jnp.float32).T
        if mirror_bf16:
            h = jnp.dot(h.astype(jnp.bfloat16), wt.astype(jnp.bfloat16),
                        preferred_element_type=jnp.float32)
        else:
            h = jnp.dot(h, wt, preferred_element_type=jnp.float32)
        h = h + jnp.asarray(b, jnp.float32)
        h = jnp.maximum(h, 0.0)
        mean = jnp.mean(h, axis=0, keepdims=True)
        var = jnp.mean((h - mean) ** 2, axis=0, keepdims=True)
        h = (h - mean) / jnp.sqrt(var + BN_EPS) * g + beta
    return h.astype(cell_src.dtype)


if __name__ == "__main__":
    # Small shapes implied by the module: 2-D input [batch, input_dim].
    batch = 8
    input_dim = 16
    hid_dims = [32, 24]
    out_dim = 8
    # dropout = 0.0 -> identity, matches in-kernel semantics.

    key = jax.random.PRNGKey(0)
    key, kx = jax.random.split(key)
    cell_src = jax.random.normal(kx, (batch, input_dim), dtype=jnp.float32)

    params = init_nn_encoder_params(key, input_dim, out_dim, hid_dims)
    prepared = prepare_encoder_params(params)     # one-time pack (transpose/pad/bf16)

    out = nn_encoder_forward(cell_src, prepared)
    out = jax.block_until_ready(out)

    assert out.shape == (batch, out_dim), out.shape
    assert bool(jnp.all(jnp.isfinite(out)))

    ref = _reference_forward(cell_src, params, mirror_bf16=USE_BF16_MATMUL)
    assert bool(jnp.allclose(out, ref, atol=2e-2, rtol=2e-2)), (
        float(jnp.max(jnp.abs(out - ref))))

    print("KERNEL_OK")
</pallas_src>

<mosaic_0001>
module attributes {stable_mosaic.version = 11 : i64} {
  func.func @kernel(%arg0: memref<8x128xbf16, #tpu.memory_space<vmem>>, %arg1: memref<128x128xbf16, #tpu.memory_space<vmem>>, %arg2: memref<8x128xf32, #tpu.memory_space<vmem>>, %arg3: memref<128x128xbf16, #tpu.memory_space<vmem>>, %arg4: memref<8x128xf32, #tpu.memory_space<vmem>>, %arg5: memref<128x128xbf16, #tpu.memory_space<vmem>>, %arg6: memref<8x128xf32, #tpu.memory_space<vmem>>, %arg7: memref<8x128xf32, #tpu.memory_space<vmem>>) attributes {dimension_semantics = [], scalar_prefetch = 0 : i64, scratch_operands = 0 : i64, tpu.core_type = #tpu.core_type<tc>} {
    %c0 = arith.constant 0 : index
    %c0_0 = arith.constant 0 : index
    %0 = vector.load %arg0[%c0, %c0_0] : memref<8x128xbf16, #tpu.memory_space<vmem>>, vector<8x128xbf16>
    %c0_1 = arith.constant 0 : index
    %c0_2 = arith.constant 0 : index
    %1 = vector.load %arg1[%c0_1, %c0_2] : memref<128x128xbf16, #tpu.memory_space<vmem>>, vector<128x128xbf16>
    %cst = arith.constant dense<0.000000e+00> : vector<8x128xf32>
    %2 = tpu.matmul %0, %1, %cst {dimension_numbers = #tpu.dot_dimension_numbers<[1], [0], [0], [1], [0, 0, 1, 1], [], []>} : vector<8x128xbf16>, vector<128x128xbf16>, vector<8x128xf32> -> vector<8x128xf32>
    %c0_3 = arith.constant 0 : index
    %c0_4 = arith.constant 0 : index
    %3 = vector.load %arg2[%c0_3, %c0_4] : memref<8x128xf32, #tpu.memory_space<vmem>>, vector<1x128xf32>
    %4 = vector.broadcast %3 : vector<1x128xf32> to vector<8x128xf32>
    %5 = arith.addf %2, %4 : vector<8x128xf32>
    %cst_5 = arith.constant 0.000000e+00 : f32
    %6 = vector.broadcast %cst_5 : f32 to vector<8x128xf32>
    %7 = arith.maximumf %5, %6 : vector<8x128xf32>
    %cst_6 = arith.constant dense<0.000000e+00> : vector<128xf32>
    %8 = vector.multi_reduction <add>, %7, %cst_6 [0] : vector<8x128xf32> to vector<128xf32>
    %9 = vector.shape_cast %8 : vector<128xf32> to vector<1x128xf32>
    %10 = arith.mulf %7, %7 : vector<8x128xf32>
    %cst_7 = arith.constant dense<0.000000e+00> : vector<128xf32>
    %11 = vector.multi_reduction <add>, %10, %cst_7 [0] : vector<8x128xf32> to vector<128xf32>
    %12 = vector.shape_cast %11 : vector<128xf32> to vector<1x128xf32>
    %cst_8 = arith.constant 1.250000e-01 : f32
    %13 = vector.broadcast %cst_8 : f32 to vector<1x128xf32>
    %14 = arith.mulf %9, %13 : vector<1x128xf32>
    %cst_9 = arith.constant 1.250000e-01 : f32
    %15 = vector.broadcast %cst_9 : f32 to vector<1x128xf32>
    %16 = arith.mulf %12, %15 : vector<1x128xf32>
    %17 = arith.mulf %14, %14 : vector<1x128xf32>
    %18 = arith.subf %16, %17 : vector<1x128xf32>
    %cst_10 = arith.constant 0.000000e+00 : f32
    %19 = vector.broadcast %cst_10 : f32 to vector<1x128xf32>
    %20 = arith.maximumf %18, %19 : vector<1x128xf32>
    %cst_11 = arith.constant 9.99999974E-6 : f32
    %21 = vector.broadcast %cst_11 : f32 to vector<1x128xf32>
    %22 = arith.addf %20, %21 : vector<1x128xf32>
    %23 = math.rsqrt %22 : vector<1x128xf32>
    %c1 = arith.constant 1 : index
    %c0_12 = arith.constant 0 : index
    %24 = vector.load %arg2[%c1, %c0_12] : memref<8x128xf32, #tpu.memory_space<vmem>>, vector<1x128xf32>
    %25 = arith.mulf %23, %24 : vector<1x128xf32>
    %c2 = arith.constant 2 : index
    %c0_13 = arith.constant 0 : index
    %26 = vector.load %arg2[%c2, %c0_13] : memref<8x128xf32, #tpu.memory_space<vmem>>, vector<1x128xf32>
    %27 = arith.mulf %14, %25 : vector<1x128xf32>
    %28 = arith.subf %26, %27 : vector<1x128xf32>
    %29 = vector.broadcast %25 : vector<1x128xf32> to vector<8x128xf32>
    %30 = arith.mulf %7, %29 : vector<8x128xf32>
    %31 = vector.broadcast %28 : vector<1x128xf32> to vector<8x128xf32>
    %32 = arith.addf %30, %31 : vector<8x128xf32>
    %33 = arith.truncf %32 : vector<8x128xf32> to vector<8x128xbf16>
    %c0_14 = arith.constant 0 : index
    %c0_15 = arith.constant 0 : index
    %34 = vector.load %arg3[%c0_14, %c0_15] : memref<128x128xbf16, #tpu.memory_space<vmem>>, vector<128x128xbf16>
    %cst_16 = arith.constant dense<0.000000e+00> : vector<8x128xf32>
    %35 = tpu.matmul %33, %34, %cst_16 {dimension_numbers = #tpu.dot_dimension_numbers<[1], [0], [0], [1], [0, 0, 1, 1], [], []>} : vector<8x128xbf16>, vector<128x128xbf16>, vector<8x128xf32> -> vector<8x128xf32>
    %c0_17 = arith.constant 0 : index
    %c0_18 = arith.constant 0 : index
    %36 = vector.load %arg4[%c0_17, %c0_18] : memref<8x128xf32, #tpu.memory_space<vmem>>, vector<1x128xf32>
    %37 = vector.broadcast %36 : vector<1x128xf32> to vector<8x128xf32>
    %38 = arith.addf %35, %37 : vector<8x128xf32>
    %cst_19 = arith.constant 0.000000e+00 : f32
    %39 = vector.broadcast %cst_19 : f32 to vector<8x128xf32>
    %40 = arith.maximumf %38, %39 : vector<8x128xf32>
    %cst_20 = arith.constant dense<0.000000e+00> : vector<128xf32>
    %41 = vector.multi_reduction <add>, %40, %cst_20 [0] : vector<8x128xf32> to vector<128xf32>
    %42 = vector.shape_cast %41 : vector<128xf32> to vector<1x128xf32>
    %43 = arith.mulf %40, %40 : vector<8x128xf32>
    %cst_21 = arith.constant dense<0.000000e+00> : vector<128xf32>
    %44 = vector.multi_reduction <add>, %43, %cst_21 [0] : vector<8x128xf32> to vector<128xf32>
    %45 = vector.shape_cast %44 : vector<128xf32> to vector<1x128xf32>
    %cst_22 = arith.constant 1.250000e-01 : f32
    %46 = vector.broadcast %cst_22 : f32 to vector<1x128xf32>
    %47 = arith.mulf %42, %46 : vector<1x128xf32>
    %cst_23 = arith.constant 1.250000e-01 : f32
    %48 = vector.broadcast %cst_23 : f32 to vector<1x128xf32>
    %49 = arith.mulf %45, %48 : vector<1x128xf32>
    %50 = arith.mulf %47, %47 : vector<1x128xf32>
    %51 = arith.subf %49, %50 : vector<1x128xf32>
    %cst_24 = arith.constant 0.000000e+00 : f32
    %52 = vector.broadcast %cst_24 : f32 to vector<1x128xf32>
    %53 = arith.maximumf %51, %52 : vector<1x128xf32>
    %cst_25 = arith.constant 9.99999974E-6 : f32
    %54 = vector.broadcast %cst_25 : f32 to vector<1x128xf32>
    %55 = arith.addf %53, %54 : vector<1x128xf32>
    %56 = math.rsqrt %55 : vector<1x128xf32>
    %c1_26 = arith.constant 1 : index
    %c0_27 = arith.constant 0 : index
    %57 = vector.load %arg4[%c1_26, %c0_27] : memref<8x128xf32, #tpu.memory_space<vmem>>, vector<1x128xf32>
    %58 = arith.mulf %56, %57 : vector<1x128xf32>
    %c2_28 = arith.constant 2 : index
    %c0_29 = arith.constant 0 : index
    %59 = vector.load %arg4[%c2_28, %c0_29] : memref<8x128xf32, #tpu.memory_space<vmem>>, vector<1x128xf32>
    %60 = arith.mulf %47, %58 : vector<1x128xf32>
    %61 = arith.subf %59, %60 : vector<1x128xf32>
    %62 = vector.broadcast %58 : vector<1x128xf32> to vector<8x128xf32>
    %63 = arith.mulf %40, %62 : vector<8x128xf32>
    %64 = vector.broadcast %61 : vector<1x128xf32> to vector<8x128xf32>
    %65 = arith.addf %63, %64 : vector<8x128xf32>
    %66 = arith.truncf %65 : vector<8x128xf32> to vector<8x128xbf16>
    %c0_30 = arith.constant 0 : index
    %c0_31 = arith.constant 0 : index
    %67 = vector.load %arg5[%c0_30, %c0_31] : memref<128x128xbf16, #tpu.memory_space<vmem>>, vector<128x128xbf16>
    %cst_32 = arith.constant dense<0.000000e+00> : vector<8x128xf32>
    %68 = tpu.matmul %66, %67, %cst_32 {dimension_numbers = #tpu.dot_dimension_numbers<[1], [0], [0], [1], [0, 0, 1, 1], [], []>} : vector<8x128xbf16>, vector<128x128xbf16>, vector<8x128xf32> -> vector<8x128xf32>
    %c0_33 = arith.constant 0 : index
    %c0_34 = arith.constant 0 : index
    %69 = vector.load %arg6[%c0_33, %c0_34] : memref<8x128xf32, #tpu.memory_space<vmem>>, vector<1x128xf32>
    %70 = vector.broadcast %69 : vector<1x128xf32> to vector<8x128xf32>
    %71 = arith.addf %68, %70 : vector<8x128xf32>
    %cst_35 = arith.constant 0.000000e+00 : f32
    %72 = vector.broadcast %cst_35 : f32 to vector<8x128xf32>
    %73 = arith.maximumf %71, %72 : vector<8x128xf32>
    %cst_36 = arith.constant dense<0.000000e+00> : vector<128xf32>
    %74 = vector.multi_reduction <add>, %73, %cst_36 [0] : vector<8x128xf32> to vector<128xf32>
    %75 = vector.shape_cast %74 : vector<128xf32> to vector<1x128xf32>
    %76 = arith.mulf %73, %73 : vector<8x128xf32>
    %cst_37 = arith.constant dense<0.000000e+00> : vector<128xf32>
    %77 = vector.multi_reduction <add>, %76, %cst_37 [0] : vector<8x128xf32> to vector<128xf32>
    %78 = vector.shape_cast %77 : vector<128xf32> to vector<1x128xf32>
    %cst_38 = arith.constant 1.250000e-01 : f32
    %79 = vector.broadcast %cst_38 : f32 to vector<1x128xf32>
    %80 = arith.mulf %75, %79 : vector<1x128xf32>
    %cst_39 = arith.constant 1.250000e-01 : f32
    %81 = vector.broadcast %cst_39 : f32 to vector<1x128xf32>
    %82 = arith.mulf %78, %81 : vector<1x128xf32>
    %83 = arith.mulf %80, %80 : vector<1x128xf32>
    %84 = arith.subf %82, %83 : vector<1x128xf32>
    %cst_40 = arith.constant 0.000000e+00 : f32
    %85 = vector.broadcast %cst_40 : f32 to vector<1x128xf32>
    %86 = arith.maximumf %84, %85 : vector<1x128xf32>
    %cst_41 = arith.constant 9.99999974E-6 : f32
    %87 = vector.broadcast %cst_41 : f32 to vector<1x128xf32>
    %88 = arith.addf %86, %87 : vector<1x128xf32>
    %89 = math.rsqrt %88 : vector<1x128xf32>
    %c1_42 = arith.constant 1 : index
    %c0_43 = arith.constant 0 : index
    %90 = vector.load %arg6[%c1_42, %c0_43] : memref<8x128xf32, #tpu.memory_space<vmem>>, vector<1x128xf32>
    %91 = arith.mulf %89, %90 : vector<1x128xf32>
    %c2_44 = arith.constant 2 : index
    %c0_45 = arith.constant 0 : index
    %92 = vector.load %arg6[%c2_44, %c0_45] : memref<8x128xf32, #tpu.memory_space<vmem>>, vector<1x128xf32>
    %93 = arith.mulf %80, %91 : vector<1x128xf32>
    %94 = arith.subf %92, %93 : vector<1x128xf32>
    %95 = vector.broadcast %91 : vector<1x128xf32> to vector<8x128xf32>
    %96 = arith.mulf %73, %95 : vector<8x128xf32>
    %97 = vector.broadcast %94 : vector<1x128xf32> to vector<8x128xf32>
    %98 = arith.addf %96, %97 : vector<8x128xf32>
    %c0_46 = arith.constant 0 : index
    %c0_47 = arith.constant 0 : index
    %99 = vector.load %arg7[%c0_46, %c0_47] : memref<8x128xf32, #tpu.memory_space<vmem>>, vector<8x128xf32>
    tpu.vector_store %arg7[%c0_46, %c0_47], %98 {strides = array<i32>} : memref<8x128xf32, #tpu.memory_space<vmem>>, vector<8x128xf32>,
    return
  }
}

</mosaic_0001>

<bundles_post_ra>
// kernel: fwd.1
= control target key start
LH: loop header
LB: loop body
LE: loop exit
PB: predicated region body
PF: predicated region fallthrough
CT: control target
= control target key end

     0   :  { %12 = vsyncpa [#allocation3], 0  ;;  %s775_s0 = inlined_call_operand.vmem [shape: bf16[8,128], index: 0, kind: input, shape index: {}]   ;;  %s776_s1 = inlined_call_operand.hbm [shape: bf16[128,128], index: 1, kind: input, shape index: {}]   ;;  %s777_s2 = inlined_call_operand.vmem [shape: f32[8,128], index: 2, kind: input, shape index: {}]   ;;  %s778_s3 = inlined_call_operand.hbm [shape: bf16[128,128], index: 3, kind: input, shape index: {}]   ;;  %s779_s4 = inlined_call_operand.vmem [shape: f32[8,128], index: 4, kind: input, shape index: {}]   ;;  %s780_s5 = inlined_call_operand.hbm [shape: bf16[128,128], index: 5, kind: input, shape index: {}]   ;;  %s781_s6 = inlined_call_operand.vmem [shape: f32[8,128], index: 6, kind: input, shape index: {}]   ;;  %s782_s7 = inlined_call_operand.hbm [shape: f32[8,128], index: 7, kind: output, shape index: {}]  }
   0x1   :  { %13 = vsyncpa [#allocation6], 0 }
   0x2   :  { %14 = vsyncpa [#allocation4], 0  ;;  %s36_s26 = sshll.u32 %s778_s3, 4  ;;  %s687_s27 = smov [#allocation5]   ;;  %s37_s26 = int_to_ptr.hbm [resolvable:$true] %s36_s26 }
   0x3   :  { %s38_s28 = sshll.u32 %s687_s27, 4  ;;  %s21_s8 = sshll.u32 %s776_s1, 4  ;;  %s39_s28 = int_to_ptr.vmem [resolvable:$true] %s38_s28  ;;  %s22_s8 = int_to_ptr.hbm [resolvable:$true] %s21_s8 }
   0x4   :  { %s688_s9 = smov 64   ;;  %s689_s10 = smov 4  }
   0x5   :  { %44 = dma.hbm_to_vmem [thread:$0]  %s37_s26, 1024, %s39_s28, [#allocation6], %s688_s9, %s688_s9, %s689_s10  }
   0x6   :  { %s690_s11 = smov [#allocation2]   ;;  %s51_s15 = sshll.u32 %s780_s5, 4  ;;  %s52_s15 = int_to_ptr.hbm [resolvable:$true] %s51_s15 }
   0x7   :  { %s23_s12 = sshll.u32 %s690_s11, 4  ;;  %s691_s3 = smov [#allocation7]   ;;  %s24_s12 = int_to_ptr.vmem [resolvable:$true] %s23_s12 }
   0x8   :  { %29 = dma.hbm_to_vmem [thread:$0]  %s22_s8, 1024, %s24_s12, [#allocation3], %s688_s9, %s688_s9, %s689_s10  }
   0x9   :  { %s53_s16 = sshll.u32 %s691_s3, 4  ;;  %s54_s16 = int_to_ptr.vmem [resolvable:$true] %s53_s16 }
   0xa   :  { %59 = dma.hbm_to_vmem [thread:$0]  %s52_s15, 1024, %s54_s16, [#allocation6], %s688_s9, %s688_s9, %s689_s10  }
   0xb   :  { %681 = dma.done.wait [#allocation3], 1024  }
   0xc   :  { %682 = vsyncadd [#allocation3], 4294966272 }
   0xd   :  { %683 = dma.done.wait [#allocation6], 2048  }
   0xe   :  { %684 = vsyncadd [#allocation6], 4294965248  ;;  %v553_v0 = vld [vmem:[#allocation2 + $0x38] sm:$0xff]  ;;  %v552_v1 = vld [vmem:[#allocation2 + $0x30] sm:$0xff]  ;;  %s692_s9 = smov [#allocation8]   ;;  %s439_s13 = sshll.u32 %s782_s7, 4  ;;  %s440_s13 = int_to_ptr.hbm [resolvable:$true] %s439_s13 }
   0xf   :  { %141 = vmatpush.bf16.msra.mxu0 %v553_v0  ;;  %v551_v2 = vld [vmem:[#allocation2 + $0x28] sm:$0xff]  ;;  %v550_v3 = vld [vmem:[#allocation2 + $0x20] sm:$0xff]  ;;  %v549_v4 = vld [vmem:[#allocation2 + $0x18] sm:$0xff]  ;;  %s437_s10 = sshll.u32 %s692_s9, 4  ;;  %s438_s10 = int_to_ptr.vmem [resolvable:$true] %s437_s10 }
  0x10   :  { %v548_v5 = vld [vmem:[#allocation2 + $0x10] sm:$0xff]  ;;  %v547_v6 = vld [vmem:[#allocation2 + $0x8] sm:$0xff]  ;;  %v546_v7 = vld [vmem:[#allocation2] sm:$0xff] }
  0x11   :  { %v74_v8 = vld [vmem:[%s775_s0] sm:$0xf]  ;;  %v560_v10 = vld [vmem:[#allocation5 + $0x30] sm:$0xff]  ;;  %v559_v11 = vld [vmem:[#allocation5 + $0x28] sm:$0xff] }
  0x12   :  { %v561_v9 = vld [vmem:[#allocation5 + $0x38] sm:$0xff]  ;;  %v558_v12 = vld [vmem:[#allocation5 + $0x20] sm:$0xff]  ;;  %v556_v17 = vld [vmem:[#allocation5 + $0x10] sm:$0xff] }
  0x13   :  { %142 = vmatpush.bf16.msra.mxu0 %v552_v1  ;;  %260 = vmatpush.bf16.msra.mxu1 %v561_v9  ;;  %v576_v13 = vld [vmem:[%s777_s2] ss:$0 sm:$0xff]  ;;  %v555_v21 = vld [vmem:[#allocation5 + $0x8] sm:$0xff]  ;;  %v554_v27 = vld [vmem:[#allocation5] sm:$0xff] }
  0x14   :  { %v557_v14 = vld [vmem:[#allocation5 + $0x18] sm:$0xff]  ;;  %v568_v59 = vld [vmem:[#allocation7 + $0x30] sm:$0xff]  ;;  %v567_v60 = vld [vmem:[#allocation7 + $0x28] sm:$0xff] }
  0x15   :  { %v184_v47 = vld [vmem:[%s777_s2 + $0x1] sm:$0x1]  ;;  %v186_v50 = vld [vmem:[%s777_s2 + $0x2] sm:$0x1]  ;;  %v566_v61 = vld [vmem:[#allocation7 + $0x20] sm:$0xff] }
  0x16   :  { %v569_v58 = vld [vmem:[#allocation7 + $0x38] sm:$0xff] }
  0x17   :  { %143 = vmatpush.bf16.msra.mxu0 %v551_v2  ;;  %261 = vmatpush.bf16.msra.mxu1 %v560_v10  ;;  %v577_v62 = vld [vmem:[%s779_s4] ss:$0 sm:$0xff]  ;;  %v564_v2 = vld [vmem:[#allocation7 + $0x10] sm:$0xff] }
  0x18   :  { %379 = vmatpush.bf16.msra.mxu2 %v569_v58  ;;  %v565_v63 = vld [vmem:[#allocation7 + $0x18] sm:$0xff] }
  0x1b   :  { %144 = vmatpush.bf16.msra.mxu0 %v550_v3  ;;  %262 = vmatpush.bf16.msra.mxu1 %v559_v11 }
  0x1c   :  { %380 = vmatpush.bf16.msra.mxu2 %v568_v59 }
  0x1f   :  { %145 = vmatpush.bf16.msra.mxu0 %v549_v4  ;;  %263 = vmatpush.bf16.msra.mxu1 %v558_v12  ;;  %v562_v12 = vld [vmem:[#allocation7] sm:$0xff] }
  0x20   :  { %381 = vmatpush.bf16.msra.mxu2 %v567_v60 }
  0x23   :  { %146 = vmatpush.bf16.msra.mxu0 %v548_v5  ;;  %264 = vmatpush.bf16.msra.mxu1 %v557_v14 }
  0x24   :  { %382 = vmatpush.bf16.msra.mxu2 %v566_v61 }
  0x27   :  { %147 = vmatpush.bf16.msra.mxu0 %v547_v6  ;;  %265 = vmatpush.bf16.msra.mxu1 %v556_v17  ;;  %v563_v6 = vld [vmem:[#allocation7 + $0x8] sm:$0xff] }
  0x28   :  { %383 = vmatpush.bf16.msra.mxu2 %v565_v63 }
  0x2b   :  { %148 = vmatpush.bf16.msra.mxu0 %v546_v7  ;;  %266 = vmatpush.bf16.msra.mxu1 %v555_v21 }
  0x2c   :  { %384 = vmatpush.bf16.msra.mxu2 %v564_v2 }
  0x2e   :  { %149 = vmatmul.bf16.vlgmr.msra.gmra.mxu0 %v74_v8 }
  0x2f   :  { %267 = vmatpush.bf16.msra.mxu1 %v554_v27 }
  0x30   :  { %385 = vmatpush.bf16.msra.mxu2 %v563_v6 }
  0x34   :  { %386 = vmatpush.bf16.msra.mxu2 %v562_v12  ;;  %v424_v12 = vld [vmem:[%s781_s6 + $0x2] sm:$0x1] }
  0xab   :  { %v150_v15 = vpop.f32.mrf.mxu0 }
  0xac   :  { %v151_v16 = vadd.f32 %v576_v13, %v150_v15 }
  0xae   :  { %v154_v18 = vmax.f32 %v151_v16, 0.0 }
  0xb0   :  { %v155_v19 = vrot.slane %v154_v18, 4  ;;  %v161_v20 = vmul.f32 %v154_v18, %v154_v18 }
  0xb2   :  { %v156_v22 = vadd.f32 %v155_v19, %v154_v18  ;;  %v162_v23 = vrot.slane %v161_v20, 4 }
  0xb3   :  { %v152_v24 = vpop.f32.mrf.mxu0 }
  0xb4   :  { %v157_v25 = vrot.slane %v156_v22, 2  ;;  %v163_v26 = vadd.f32 %v162_v23, %v161_v20 }
  0xb6   :  { %v164_v28 = vrot.slane %v163_v26, 2  ;;  %v158_v29 = vadd.f32 %v157_v25, %v156_v22 }
  0xb8   :  { %v165_v30 = vadd.f32 %v164_v28, %v163_v26  ;;  %v159_v31 = vrot.slane %v158_v29, 1 }
  0xba   :  { %v166_v32 = vrot.slane %v165_v30, 1  ;;  %v160_v33 = vadd.f32 %v159_v31, %v158_v29 }
  0xbc   :  { %v167_v34 = vadd.f32 %v166_v32, %v165_v30  ;;  %v168_v35 = vmul.f32 0.125, %v160_v33  ;;  %v303_v32 = vld [vmem:[%s779_s4 + $0x1] sm:$0x1] }
  0xbe   :  { %v169_v36 = vmul.f32 0.125, %v167_v34  ;;  %v170_v37 = vmul.f32 %v168_v35, %v168_v35 }
  0xc0   :  { %v171_v38 = vsub.f32 %v169_v36, %v170_v37 }
  0xc2   :  { %v172_v39 = vmax.f32 %v171_v38, 0.0 }
  0xc4   :  { %v173_v40 = vadd.f32 1e-05, %v172_v39 }
  0xc6   :  { %579 = vrsqrt.f32 %v173_v40  ;;  %vm180_vm1 = vweird.f32 %v173_v40 }
  0xcc   :  { %v580_v41 = vpop.eup %579 }
  0xcd   :  { %v175_v42 = vmul.f32 %v580_v41, %v173_v40  ;;  %vm181_vm0 = vweird.f32 %v580_v41 }
  0xce   :  { %vm182_vm2 = vmor %vm180_vm1, %vm181_vm0 }
  0xcf   :  { %v176_v43 = vmul.f32 %v580_v41, %v175_v42 }
  0xd1   :  { %v177_v44 = vmul.f32 0.5, %v176_v43  ;;  %v578_v43 = vld [vmem:[%s781_s6] ss:$0 sm:$0xff] }
  0xd3   :  { %v178_v45 = vsub.f32 1.5, %v177_v44 }
  0xd5   :  { %v179_v46 = vmul.f32 %v580_v41, %v178_v45 }
  0xd7   :  { %v183_v48 = vsel %vm182_vm2, %v580_v41, %v179_v46 }
  0xd8   :  { %v185_v49 = vmul.f32 %v184_v47, %v183_v48 }
  0xda   :  { %v187_v51 = vmul.f32 %v185_v49, %v168_v35  ;;  %v189_v52 = vperm.slane %v185_v49, 0  ;;  %v305_v35 = vld [vmem:[%s779_s4 + $0x2] sm:$0x1] }
  0xdc   :  { %v188_v53 = vsub.f32 %v186_v50, %v187_v51  ;;  %v190_v54 = vmul.f32 %v189_v52, %v154_v18 }
  0xde   :  { %v191_v55 = vperm.slane %v188_v53, 0 }
  0xe0   :  { %v192_v56 = vadd.f32 %v191_v55, %v190_v54 }
  0xe2   :  { %v193_v57 = vpack.c.bf16 %v192_v56, %v192_v56 }
  0xe4   :  { %268 = vmatmul.bf16.vlgmr.msra.gmra.mxu1 %v193_v57 }
 0x161   :  { %v269_v0 = vpop.f32.mrf.mxu1 }
 0x162   :  { %v270_v1 = vadd.f32 %v577_v62, %v269_v0 }
 0x164   :  { %v273_v3 = vmax.f32 %v270_v1, 0.0 }
 0x166   :  { %v274_v4 = vrot.slane %v273_v3, 4  ;;  %v280_v5 = vmul.f32 %v273_v3, %v273_v3 }
 0x168   :  { %v275_v7 = vadd.f32 %v274_v4, %v273_v3  ;;  %v281_v8 = vrot.slane %v280_v5, 4 }
 0x169   :  { %v271_v9 = vpop.f32.mrf.mxu1 }
 0x16a   :  { %v276_v10 = vrot.slane %v275_v7, 2  ;;  %v282_v11 = vadd.f32 %v281_v8, %v280_v5  ;;  %v422_v9 = vld [vmem:[%s781_s6 + $0x1] sm:$0x1] }
 0x16c   :  { %v283_v13 = vrot.slane %v282_v11, 2  ;;  %v277_v14 = vadd.f32 %v276_v10, %v275_v7 }
 0x16e   :  { %v284_v15 = vadd.f32 %v283_v13, %v282_v11  ;;  %v278_v16 = vrot.slane %v277_v14, 1 }
 0x170   :  { %v285_v17 = vrot.slane %v284_v15, 1  ;;  %v279_v18 = vadd.f32 %v278_v16, %v277_v14 }
 0x172   :  { %v286_v19 = vadd.f32 %v285_v17, %v284_v15  ;;  %v287_v20 = vmul.f32 0.125, %v279_v18 }
 0x174   :  { %v288_v21 = vmul.f32 0.125, %v286_v19  ;;  %v289_v22 = vmul.f32 %v287_v20, %v287_v20 }
 0x176   :  { %v290_v23 = vsub.f32 %v288_v21, %v289_v22 }
 0x178   :  { %v291_v24 = vmax.f32 %v290_v23, 0.0 }
 0x17a   :  { %v292_v25 = vadd.f32 1e-05, %v291_v24 }
 0x17c   :  { %581 = vrsqrt.f32 %v292_v25  ;;  %vm299_vm4 = vweird.f32 %v292_v25 }
 0x182   :  { %v582_v26 = vpop.eup %581 }
 0x183   :  { %v294_v27 = vmul.f32 %v582_v26, %v292_v25  ;;  %vm300_vm3 = vweird.f32 %v582_v26 }
 0x184   :  { %vm301_vm5 = vmor %vm299_vm4, %vm300_vm3 }
 0x185   :  { %v295_v28 = vmul.f32 %v582_v26, %v294_v27 }
 0x187   :  { %v296_v29 = vmul.f32 0.5, %v295_v28 }
 0x189   :  { %v297_v30 = vsub.f32 1.5, %v296_v29 }
 0x18b   :  { %v298_v31 = vmul.f32 %v582_v26, %v297_v30 }
 0x18d   :  { %v302_v33 = vsel %vm301_vm5, %v582_v26, %v298_v31 }
 0x18e   :  { %v304_v34 = vmul.f32 %v303_v32, %v302_v33 }
 0x190   :  { %v306_v36 = vmul.f32 %v304_v34, %v287_v20  ;;  %v308_v37 = vperm.slane %v304_v34, 0 }
 0x192   :  { %v307_v38 = vsub.f32 %v305_v35, %v306_v36  ;;  %v309_v39 = vmul.f32 %v308_v37, %v273_v3 }
 0x194   :  { %v310_v40 = vperm.slane %v307_v38, 0 }
 0x196   :  { %v311_v41 = vadd.f32 %v310_v40, %v309_v39 }
 0x198   :  { %v312_v42 = vpack.c.bf16 %v311_v41, %v311_v41 }
 0x19a   :  { %387 = vmatmul.bf16.vlgmr.msra.gmra.mxu2 %v312_v42 }
 0x21d   :  { %v388_v44 = vpop.f32.mrf.mxu2 }
 0x21e   :  { %v389_v45 = vadd.f32 %v578_v43, %v388_v44 }
 0x220   :  { %v392_v46 = vmax.f32 %v389_v45, 0.0 }
 0x222   :  { %v393_v47 = vrot.slane %v392_v46, 4  ;;  %v399_v48 = vmul.f32 %v392_v46, %v392_v46 }
 0x224   :  { %v394_v49 = vadd.f32 %v393_v47, %v392_v46  ;;  %v400_v50 = vrot.slane %v399_v48, 4 }
 0x225   :  { %v390_v51 = vpop.f32.mrf.mxu2 }
 0x226   :  { %v395_v52 = vrot.slane %v394_v49, 2  ;;  %v401_v53 = vadd.f32 %v400_v50, %v399_v48 }
 0x228   :  { %v396_v54 = vadd.f32 %v395_v52, %v394_v49  ;;  %v402_v55 = vrot.slane %v401_v53, 2 }
 0x22a   :  { %v397_v56 = vrot.slane %v396_v54, 1  ;;  %v403_v57 = vadd.f32 %v402_v55, %v401_v53 }
 0x22c   :  { %v404_v58 = vrot.slane %v403_v57, 1  ;;  %v398_v59 = vadd.f32 %v397_v56, %v396_v54 }
 0x22e   :  { %v405_v60 = vadd.f32 %v404_v58, %v403_v57  ;;  %v406_v61 = vmul.f32 0.125, %v398_v59 }
 0x230   :  { %v407_v62 = vmul.f32 0.125, %v405_v60  ;;  %v408_v63 = vmul.f32 %v406_v61, %v406_v61 }
 0x232   :  { %v409_v0 = vsub.f32 %v407_v62, %v408_v63 }
 0x234   :  { %v410_v1 = vmax.f32 %v409_v0, 0.0 }
 0x236   :  { %v411_v2 = vadd.f32 1e-05, %v410_v1 }
 0x238   :  { %583 = vrsqrt.f32 %v411_v2  ;;  %vm418_vm7 = vweird.f32 %v411_v2 }
 0x23e   :  { %v584_v3 = vpop.eup %583 }
 0x23f   :  { %v413_v4 = vmul.f32 %v584_v3, %v411_v2  ;;  %vm419_vm6 = vweird.f32 %v584_v3 }
 0x240   :  { %vm420_vm8 = vmor %vm418_vm7, %vm419_vm6 }
 0x241   :  { %v414_v5 = vmul.f32 %v584_v3, %v413_v4 }
 0x243   :  { %v415_v6 = vmul.f32 0.5, %v414_v5 }
 0x245   :  { %v416_v7 = vsub.f32 1.5, %v415_v6 }
 0x247   :  { %v417_v8 = vmul.f32 %v584_v3, %v416_v7 }
 0x249   :  { %v421_v10 = vsel %vm420_vm8, %v584_v3, %v417_v8 }
 0x24a   :  { %v423_v11 = vmul.f32 %v422_v9, %v421_v10 }
 0x24c   :  { %v425_v13 = vmul.f32 %v423_v11, %v406_v61  ;;  %v427_v14 = vperm.slane %v423_v11, 0 }
 0x24e   :  { %v426_v15 = vsub.f32 %v424_v12, %v425_v13  ;;  %v428_v16 = vmul.f32 %v427_v14, %v392_v46 }
 0x250   :  { %v429_v17 = vperm.slane %v426_v15, 0 }
 0x252   :  { %v430_v18 = vadd.f32 %v429_v17, %v428_v16 }
 0x254   :  { %431 = vst [vmem:[#allocation8] sm:$0xff] %v430_v18 }
 0x255   :  { %442 = dma.vmem_to_hbm [thread:$0]  %s438_s10, 128, %s440_s13, [#allocation4]  }
 0x256   :  { %685 = dma.done.wait [#allocation4], 128  }
 0x257   :  { %686 = vsyncadd [#allocation4], 4294967168 }
 0x258   :  { %447 = vsyncpa [#allocation3], 1 }
 0x259   :  { %448 = vsyncpa [#allocation6], 1 }
 0x25a   :  { %449 = vsyncpa [#allocation4], 1 }

</bundles_post_ra>
